<compile_context>
chip_gen: v6e
topology: v6e:2x2x1
jax: 0.10.0
libtpu: 0.0.40
codegen_flags: <defaults>
</compile_context>

<pallas_src>
import functools

import jax
import jax.numpy as jnp
from jax.experimental import pallas as pl
from jax.experimental.pallas import tpu as pltpu

_LANES = 128


def _combined_loss_kernel(logits_ref, targets_ref, dice_ref, ce_ref,
                          inter_acc, sump_acc, sumt_acc, ce_acc,
                          *, smooth, hw, needs_mask):
    # logits_ref block:  (1, C, TS, 128)    targets_ref block: (1, TS, 128)
    k = pl.program_id(1)
    c = logits_ref.shape[1]
    ts = logits_ref.shape[2]

    @pl.when(k == 0)
    def _init():
        inter_acc[...] = jnp.zeros_like(inter_acc)
        sump_acc[...] = jnp.zeros_like(sump_acc)
        sumt_acc[...] = jnp.zeros_like(sumt_acc)
        ce_acc[...] = jnp.zeros_like(ce_acc)

    # Native-dtype DMA; upcast to f32 in-kernel (accumulate in f32).
    x = logits_ref[0].astype(jnp.float32)                      # (C, TS, 128)
    t = targets_ref[0]                                         # (TS, 128) int32
    class_ids = jax.lax.broadcasted_iota(jnp.int32, (c, ts, _LANES), 0)
    onehot = (class_ids == t[None, :, :]).astype(jnp.float32)  # (C, TS, 128)

    def accumulate(xv, oh, valid):
        p = xv * oh                                            # (C, TS, 128)
        # ---- Dice partials: lane-wide accumulators, cross-lane reduce deferred
        inter_acc[...] += jnp.sum(p, axis=1)                   # (C, 128)
        sump_acc[...] += jnp.sum(xv, axis=1)                   # (C, 128)
        sumt_acc[...] += jnp.sum(oh, axis=1)                   # (C, 128)
        # ---- Cross entropy partial: class reduce = across-slab VALU ops.
        m = jnp.max(xv, axis=0)                                # (TS, 128)
        lse = m + jnp.log(jnp.sum(jnp.exp(xv - m[None]), axis=0))
        logit_t = jnp.sum(p, axis=0)                           # (TS, 128)
        contrib = lse - logit_t
        if valid is not None:
            contrib = jnp.where(valid, contrib, 0.0)
        ce_acc[...] += jnp.sum(contrib, axis=0, keepdims=True)  # (1, 128)

    if needs_mask:
        last = pl.num_programs(1) - 1

        @pl.when(k < last)
        def _body_unmasked():
            accumulate(x, onehot, None)

        @pl.when(k == last)
        def _body_masked():
            row_idx = jax.lax.broadcasted_iota(jnp.int32, (ts, _LANES), 0)
            lane_idx = jax.lax.broadcasted_iota(jnp.int32, (ts, _LANES), 1)
            pix = (k * ts + row_idx) * _LANES + lane_idx
            valid = pix < hw                                   # (TS, 128)
            xm = jnp.where(valid[None], x, 0.0)
            ohm = jnp.where(valid[None], onehot, 0.0)
            accumulate(xm, ohm, valid)
    else:
        accumulate(x, onehot, None)

    # ---- finalize on the last pixel tile: single cross-lane reduce + divide.
    @pl.when(k == pl.num_programs(1) - 1)
    def _finalize():
        inter = jnp.sum(inter_acc[...], axis=1, keepdims=True)   # (C, 1)
        sump = jnp.sum(sump_acc[...], axis=1, keepdims=True)
        sumt = jnp.sum(sumt_acc[...], axis=1, keepdims=True)
        dice_ref[0] = (2.0 * inter + smooth) / (sump + sumt + smooth)
        ce_ref[0] = jnp.sum(ce_acc[...], axis=1, keepdims=True)  # (1, 1)


def _choose_tile_rows(num_classes, rows_total, dtype_bytes,
                      target_bytes=2 * 1024 * 1024,
                      max_bytes=4 * 1024 * 1024):
    """Rows (of 128 pixels) per grid step, sized so the logits block is ~1-4 MiB.

    The 1-4 MiB block target fits the double-buffered pipeline (2 inputs x 2
    buffers) with large margin inside the scoped-VMEM budget of all of
    v5e / v6e / v7x while amortizing the ~0.35 us per-grid-step overhead.
    """
    bytes_per_row = num_classes * _LANES * dtype_bytes
    ts = max(1, target_bytes // bytes_per_row)
    ts = min(ts, max(1, max_bytes // bytes_per_row))
    if ts >= rows_total:
        return rows_total, 1                 # single tile: block dim == array dim
    ts = max(8, (ts // 8) * 8)               # sublane-aligned tile (multiple of 8)
    ts = min(ts, rows_total)
    if ts == rows_total:
        return rows_total, 1
    return ts, pl.cdiv(rows_total, ts)


def combined_loss(logits_nchw, targets, *, weight=0.5, smooth=1.0):
    """logits_nchw: [B, C, H, W]; targets: [B, H, W] int labels."""
    B, C, H, W = logits_nchw.shape
    HW = H * W

    # Pure reshapes only (no transpose): NCHW -> (B, C, HW); targets -> (B, HW).
    x = logits_nchw.reshape(B, C, HW)
    t = targets.reshape(B, HW).astype(jnp.int32)

    # Pad pixel axis to a multiple of 128 lanes only when needed (rare).
    hw_pad = pl.cdiv(HW, _LANES) * _LANES
    if hw_pad != HW:
        x = jnp.pad(x, ((0, 0), (0, 0), (0, hw_pad - HW)))
        t = jnp.pad(t, ((0, 0), (0, hw_pad - HW)))
    rows = hw_pad // _LANES

    # Sublane-filling layout: pixels occupy both sublanes and lanes, classes
    # are the leading (vreg-slab) axis.  Contiguous reshape, no relayout.
    x = x.reshape(B, C, rows, _LANES)
    t = t.reshape(B, rows, _LANES)

    ts, num_tiles = _choose_tile_rows(C, rows, x.dtype.itemsize)
    needs_mask = (hw_pad != HW) or (rows % ts != 0)

    kernel = functools.partial(_combined_loss_kernel, smooth=float(smooth),
                               hw=HW, needs_mask=needs_mask)

    dice_scores, ce_sums = pl.pallas_call(
        kernel,
        out_shape=(
            jax.ShapeDtypeStruct((B, C, 1), jnp.float32),   # per-(b, c) dice score
            jax.ShapeDtypeStruct((B, 1, 1), jnp.float32),   # per-b CE sum over pixels
        ),
        grid=(B, num_tiles),
        in_specs=[
            pl.BlockSpec((1, C, ts, _LANES), lambda b, k: (b, 0, k, 0)),
            pl.BlockSpec((1, ts, _LANES), lambda b, k: (b, k, 0)),
        ],
        out_specs=(
            pl.BlockSpec((1, C, 1), lambda b, k: (b, 0, 0)),
            pl.BlockSpec((1, 1, 1), lambda b, k: (b, 0, 0)),
        ),
        scratch_shapes=[
            pltpu.VMEM((C, _LANES), jnp.float32),   # intersection partials
            pltpu.VMEM((C, _LANES), jnp.float32),   # sum(probs) partials
            pltpu.VMEM((C, _LANES), jnp.float32),   # sum(onehot) partials
            pltpu.VMEM((1, _LANES), jnp.float32),   # CE partials
        ],
        compiler_params=pltpu.CompilerParams(
            dimension_semantics=("parallel", "arbitrary"),
            vmem_limit_bytes=32 * 1024 * 1024),
    )(x, t)

    dice_loss = jnp.mean(1.0 - dice_scores)          # mean over B * C
    ce_loss = jnp.sum(ce_sums) / (B * HW)            # mean over all pixels
    return weight * dice_loss + (1.0 - weight) * ce_loss


def _reference_combined_loss(logits_nchw, targets, weight=0.5, smooth=1.0):
    """Pure-JAX reference replicating the PyTorch module semantics."""
    B, C, H, W = logits_nchw.shape
    probs = logits_nchw.astype(jnp.float32)
    onehot = jax.nn.one_hot(targets, C, dtype=jnp.float32)       # (B, H, W, C)
    onehot = jnp.transpose(onehot, (0, 3, 1, 2))                 # (B, C, H, W)
    inter = jnp.sum(probs * onehot, axis=(2, 3))
    union = jnp.sum(probs, axis=(2, 3)) + jnp.sum(onehot, axis=(2, 3))
    dice_score = (2.0 * inter + smooth) / (union + smooth)
    dice = jnp.mean(1.0 - dice_score)

    lse = jax.scipy.special.logsumexp(probs, axis=1)             # (B, H, W)
    logit_t = jnp.take_along_axis(probs, targets[:, None, :, :], axis=1)[:, 0]
    ce = jnp.mean(lse - logit_t)
    return weight * dice + (1.0 - weight) * ce


if __name__ == "__main__":
    key = jax.random.PRNGKey(0)
    k1, k2 = jax.random.split(key)

    B, C, H, W = 2, 4, 16, 16
    logits = jax.random.normal(k1, (B, C, H, W), dtype=jnp.float32)
    targets = jax.random.randint(k2, (B, H, W), 0, C, dtype=jnp.int32)

    out = combined_loss(logits, targets, weight=0.5, smooth=1.0)
    out = jax.block_until_ready(out)

    ref = _reference_combined_loss(logits, targets, weight=0.5, smooth=1.0)
    assert jnp.allclose(out, ref, atol=1e-5, rtol=1e-5), (out, ref)

    print("KERNEL_OK")
</pallas_src>

<mosaic_0001>
module attributes {stable_mosaic.version = 11 : i64} {
  func.func @_combined_loss_kernel(%arg0: i32, %arg1: i32, %arg2: memref<1x4x2x128xf32, #tpu.memory_space<vmem>>, %arg3: memref<1x2x128xi32, #tpu.memory_space<vmem>>, %arg4: memref<1x4x1xf32, #tpu.memory_space<vmem>>, %arg5: memref<1x1x1xf32, #tpu.memory_space<vmem>>, %arg6: memref<4x128xf32, #tpu.memory_space<vmem>>, %arg7: memref<4x128xf32, #tpu.memory_space<vmem>>, %arg8: memref<4x128xf32, #tpu.memory_space<vmem>>, %arg9: memref<1x128xf32, #tpu.memory_space<vmem>>) attributes {dimension_semantics = [#tpu.dimension_semantics<parallel>, #tpu.dimension_semantics<arbitrary>], iteration_bounds = array<i64: 2, 1>, scalar_prefetch = 0 : i64, scratch_operands = 4 : i64, tpu.core_type = #tpu.core_type<tc>, window_params = [{transform_indices = @transform_0, window_bounds = array<i64: 1, 4, 2, 128>}, {transform_indices = @transform_1, window_bounds = array<i64: 1, 2, 128>}, {transform_indices = @transform_2, window_bounds = array<i64: 1, 4, 1>}, {transform_indices = @transform_3, window_bounds = array<i64: 1, 1, 1>}]} {
    %c0_i32 = arith.constant 0 : i32
    %0 = arith.cmpi eq, %arg1, %c0_i32 : i32
    %1 = arith.extui %0 : i1 to i32
    %c0_i32_0 = arith.constant 0 : i32
    %2 = arith.cmpi ne, %1, %c0_i32_0 : i32
    scf.if %2 {
      %cst_31 = arith.constant 0.000000e+00 : f32
      %44 = vector.broadcast %cst_31 : f32 to vector<4x128xf32>
      %c0_32 = arith.constant 0 : index
      %c0_33 = arith.constant 0 : index
      %45 = vector.load %arg6[%c0_32, %c0_33] : memref<4x128xf32, #tpu.memory_space<vmem>>, vector<4x128xf32>
      tpu.vector_store %arg6[%c0_32, %c0_33], %44 {strides = array<i32>} : memref<4x128xf32, #tpu.memory_space<vmem>>, vector<4x128xf32>,
      %cst_34 = arith.constant 0.000000e+00 : f32
      %46 = vector.broadcast %cst_34 : f32 to vector<4x128xf32>
      %c0_35 = arith.constant 0 : index
      %c0_36 = arith.constant 0 : index
      %47 = vector.load %arg7[%c0_35, %c0_36] : memref<4x128xf32, #tpu.memory_space<vmem>>, vector<4x128xf32>
      tpu.vector_store %arg7[%c0_35, %c0_36], %46 {strides = array<i32>} : memref<4x128xf32, #tpu.memory_space<vmem>>, vector<4x128xf32>,
      %cst_37 = arith.constant 0.000000e+00 : f32
      %48 = vector.broadcast %cst_37 : f32 to vector<4x128xf32>
      %c0_38 = arith.constant 0 : index
      %c0_39 = arith.constant 0 : index
      %49 = vector.load %arg8[%c0_38, %c0_39] : memref<4x128xf32, #tpu.memory_space<vmem>>, vector<4x128xf32>
      tpu.vector_store %arg8[%c0_38, %c0_39], %48 {strides = array<i32>} : memref<4x128xf32, #tpu.memory_space<vmem>>, vector<4x128xf32>,
      %cst_40 = arith.constant 0.000000e+00 : f32
      %50 = vector.broadcast %cst_40 : f32 to vector<1x128xf32>
      %c0_41 = arith.constant 0 : index
      %c0_42 = arith.constant 0 : index
      %51 = vector.load %arg9[%c0_41, %c0_42] : memref<1x128xf32, #tpu.memory_space<vmem>>, vector<1x128xf32>
      tpu.vector_store %arg9[%c0_41, %c0_42], %50 {strides = array<i32>} : memref<1x128xf32, #tpu.memory_space<vmem>>, vector<1x128xf32>,
    } else {
    }
    %c0 = arith.constant 0 : index
    %c0_1 = arith.constant 0 : index
    %c0_2 = arith.constant 0 : index
    %c0_3 = arith.constant 0 : index
    %3 = vector.load %arg2[%c0, %c0_1, %c0_2, %c0_3] : memref<1x4x2x128xf32, #tpu.memory_space<vmem>>, vector<1x4x2x128xf32>
    %4 = vector.shape_cast %3 : vector<1x4x2x128xf32> to vector<4x2x128xf32>
    %c0_4 = arith.constant 0 : index
    %c0_5 = arith.constant 0 : index
    %c0_6 = arith.constant 0 : index
    %5 = vector.load %arg3[%c0_4, %c0_5, %c0_6] : memref<1x2x128xi32, #tpu.memory_space<vmem>>, vector<1x2x128xi32>
    %6 = vector.shape_cast %5 : vector<1x2x128xi32> to vector<2x128xi32>
    %7 = tpu.iota {dimensions = array<i32: 0>} : vector<4x2x128xi32>
    %8 = vector.shape_cast %6 : vector<2x128xi32> to vector<1x2x128xi32>
    %9 = vector.broadcast %8 : vector<1x2x128xi32> to vector<4x2x128xi32>
    %10 = arith.cmpi eq, %7, %9 : vector<4x2x128xi32>
    %11 = arith.extui %10 : vector<4x2x128xi1> to vector<4x2x128xi32>
    %12 = arith.sitofp %11 : vector<4x2x128xi32> to vector<4x2x128xf32>
    %13 = arith.mulf %4, %12 : vector<4x2x128xf32>
    %c0_7 = arith.constant 0 : index
    %c0_8 = arith.constant 0 : index
    %14 = vector.load %arg6[%c0_7, %c0_8] : memref<4x128xf32, #tpu.memory_space<vmem>>, vector<4x128xf32>
    %cst = arith.constant dense<0.000000e+00> : vector<4x128xf32>
    %15 = vector.multi_reduction <add>, %13, %cst [1] : vector<4x2x128xf32> to vector<4x128xf32>
    %16 = arith.addf %14, %15 : vector<4x128xf32>
    %c0_9 = arith.constant 0 : index
    %c0_10 = arith.constant 0 : index
    %17 = vector.load %arg6[%c0_9, %c0_10] : memref<4x128xf32, #tpu.memory_space<vmem>>, vector<4x128xf32>
    tpu.vector_store %arg6[%c0_9, %c0_10], %16 {strides = array<i32>} : memref<4x128xf32, #tpu.memory_space<vmem>>, vector<4x128xf32>,
    %c0_11 = arith.constant 0 : index
    %c0_12 = arith.constant 0 : index
    %18 = vector.load %arg7[%c0_11, %c0_12] : memref<4x128xf32, #tpu.memory_space<vmem>>, vector<4x128xf32>
    %cst_13 = arith.constant dense<0.000000e+00> : vector<4x128xf32>
    %19 = vector.multi_reduction <add>, %4, %cst_13 [1] : vector<4x2x128xf32> to vector<4x128xf32>
    %20 = arith.addf %18, %19 : vector<4x128xf32>
    %c0_14 = arith.constant 0 : index
    %c0_15 = arith.constant 0 : index
    %21 = vector.load %arg7[%c0_14, %c0_15] : memref<4x128xf32, #tpu.memory_space<vmem>>, vector<4x128xf32>
    tpu.vector_store %arg7[%c0_14, %c0_15], %20 {strides = array<i32>} : memref<4x128xf32, #tpu.memory_space<vmem>>, vector<4x128xf32>,
    %c0_16 = arith.constant 0 : index
    %c0_17 = arith.constant 0 : index
    %22 = vector.load %arg8[%c0_16, %c0_17] : memref<4x128xf32, #tpu.memory_space<vmem>>, vector<4x128xf32>
    %cst_18 = arith.constant dense<0.000000e+00> : vector<4x128xf32>
    %23 = vector.multi_reduction <add>, %12, %cst_18 [1] : vector<4x2x128xf32> to vector<4x128xf32>
    %24 = arith.addf %22, %23 : vector<4x128xf32>
    %c0_19 = arith.constant 0 : index
    %c0_20 = arith.constant 0 : index
    %25 = vector.load %arg8[%c0_19, %c0_20] : memref<4x128xf32, #tpu.memory_space<vmem>>, vector<4x128xf32>
    tpu.vector_store %arg8[%c0_19, %c0_20], %24 {strides = array<i32>} : memref<4x128xf32, #tpu.memory_space<vmem>>, vector<4x128xf32>,
    %cst_21 = arith.constant dense<0xFF800000> : vector<2x128xf32>
    %26 = vector.multi_reduction <maximumf>, %4, %cst_21 [0] : vector<4x2x128xf32> to vector<2x128xf32>
    %27 = vector.shape_cast %26 : vector<2x128xf32> to vector<1x2x128xf32>
    %28 = vector.broadcast %27 : vector<1x2x128xf32> to vector<4x2x128xf32>
    %29 = arith.subf %4, %28 : vector<4x2x128xf32>
    %30 = math.exp %29 : vector<4x2x128xf32>
    %cst_22 = arith.constant dense<0.000000e+00> : vector<2x128xf32>
    %31 = vector.multi_reduction <add>, %30, %cst_22 [0] : vector<4x2x128xf32> to vector<2x128xf32>
    %32 = math.log %31 : vector<2x128xf32>
    %33 = arith.addf %26, %32 : vector<2x128xf32>
    %cst_23 = arith.constant dense<0.000000e+00> : vector<2x128xf32>
    %34 = vector.multi_reduction <add>, %13, %cst_23 [0] : vector<4x2x128xf32> to vector<2x128xf32>
    %35 = arith.subf %33, %34 : vector<2x128xf32>
    %c0_24 = arith.constant 0 : index
    %c0_25 = arith.constant 0 : index
    %36 = vector.load %arg9[%c0_24, %c0_25] : memref<1x128xf32, #tpu.memory_space<vmem>>, vector<1x128xf32>
    %cst_26 = arith.constant dense<0.000000e+00> : vector<128xf32>
    %37 = vector.multi_reduction <add>, %35, %cst_26 [0] : vector<2x128xf32> to vector<128xf32>
    %38 = vector.shape_cast %37 : vector<128xf32> to vector<1x128xf32>
    %39 = arith.addf %36, %38 : vector<1x128xf32>
    %c0_27 = arith.constant 0 : index
    %c0_28 = arith.constant 0 : index
    %40 = vector.load %arg9[%c0_27, %c0_28] : memref<1x128xf32, #tpu.memory_space<vmem>>, vector<1x128xf32>
    tpu.vector_store %arg9[%c0_27, %c0_28], %39 {strides = array<i32>} : memref<1x128xf32, #tpu.memory_space<vmem>>, vector<1x128xf32>,
    %c0_i32_29 = arith.constant 0 : i32
    %41 = arith.cmpi eq, %arg1, %c0_i32_29 : i32
    %42 = arith.extui %41 : i1 to i32
    %c0_i32_30 = arith.constant 0 : i32
    %43 = arith.cmpi ne, %42, %c0_i32_30 : i32
    scf.if %43 {
      %c0_31 = arith.constant 0 : index
      %c0_32 = arith.constant 0 : index
      %44 = vector.load %arg6[%c0_31, %c0_32] : memref<4x128xf32, #tpu.memory_space<vmem>>, vector<4x128xf32>
      %cst_33 = arith.constant dense<0.000000e+00> : vector<4xf32>
      %45 = vector.multi_reduction <add>, %44, %cst_33 [1] : vector<4x128xf32> to vector<4xf32>
      %46 = vector.shape_cast %45 : vector<4xf32> to vector<4x1xf32>
      %c0_34 = arith.constant 0 : index
      %c0_35 = arith.constant 0 : index
      %47 = vector.load %arg7[%c0_34, %c0_35] : memref<4x128xf32, #tpu.memory_space<vmem>>, vector<4x128xf32>
      %cst_36 = arith.constant dense<0.000000e+00> : vector<4xf32>
      %48 = vector.multi_reduction <add>, %47, %cst_36 [1] : vector<4x128xf32> to vector<4xf32>
      %49 = vector.shape_cast %48 : vector<4xf32> to vector<4x1xf32>
      %c0_37 = arith.constant 0 : index
      %c0_38 = arith.constant 0 : index
      %50 = vector.load %arg8[%c0_37, %c0_38] : memref<4x128xf32, #tpu.memory_space<vmem>>, vector<4x128xf32>
      %cst_39 = arith.constant dense<0.000000e+00> : vector<4xf32>
      %51 = vector.multi_reduction <add>, %50, %cst_39 [1] : vector<4x128xf32> to vector<4xf32>
      %52 = vector.shape_cast %51 : vector<4xf32> to vector<4x1xf32>
      %cst_40 = arith.constant 2.000000e+00 : f32
      %53 = vector.broadcast %cst_40 : f32 to vector<4x1xf32>
      %54 = arith.mulf %53, %46 : vector<4x1xf32>
      %cst_41 = arith.constant 1.000000e+00 : f32
      %55 = vector.broadcast %cst_41 : f32 to vector<4x1xf32>
      %56 = arith.addf %54, %55 : vector<4x1xf32>
      %57 = arith.addf %49, %52 : vector<4x1xf32>
      %cst_42 = arith.constant 1.000000e+00 : f32
      %58 = vector.broadcast %cst_42 : f32 to vector<4x1xf32>
      %59 = arith.addf %57, %58 : vector<4x1xf32>
      %60 = arith.divf %56, %59 : vector<4x1xf32>
      %c0_43 = arith.constant 0 : index
      %c0_44 = arith.constant 0 : index
      %c0_45 = arith.constant 0 : index
      %61 = vector.load %arg4[%c0_43, %c0_44, %c0_45] : memref<1x4x1xf32, #tpu.memory_space<vmem>>, vector<1x4x1xf32>
      %62 = vector.shape_cast %61 : vector<1x4x1xf32> to vector<4x1xf32>
      %63 = vector.shape_cast %60 : vector<4x1xf32> to vector<1x4x1xf32>
      tpu.vector_store %arg4[%c0_43, %c0_44, %c0_45], %63 {strides = array<i32>} : memref<1x4x1xf32, #tpu.memory_space<vmem>>, vector<1x4x1xf32>,
      %c0_46 = arith.constant 0 : index
      %c0_47 = arith.constant 0 : index
      %64 = vector.load %arg9[%c0_46, %c0_47] : memref<1x128xf32, #tpu.memory_space<vmem>>, vector<1x128xf32>
      %cst_48 = arith.constant dense<0.000000e+00> : vector<1xf32>
      %65 = vector.multi_reduction <add>, %64, %cst_48 [1] : vector<1x128xf32> to vector<1xf32>
      %66 = vector.shape_cast %65 : vector<1xf32> to vector<1x1xf32>
      %c0_49 = arith.constant 0 : index
      %c0_50 = arith.constant 0 : index
      %c0_51 = arith.constant 0 : index
      %67 = vector.load %arg5[%c0_49, %c0_50, %c0_51] : memref<1x1x1xf32, #tpu.memory_space<vmem>>, vector<1x1x1xf32>
      %68 = vector.shape_cast %67 : vector<1x1x1xf32> to vector<1x1xf32>
      %69 = vector.shape_cast %66 : vector<1x1xf32> to vector<1x1x1xf32>
      tpu.vector_store %arg5[%c0_49, %c0_50, %c0_51], %69 {strides = array<i32>} : memref<1x1x1xf32, #tpu.memory_space<vmem>>, vector<1x1x1xf32>,
    } else {
    }
    return
  }
  func.func @transform_0(%arg0: i32, %arg1: i32) -> (i32, i32, i32, i32) {
    %c0_i32 = arith.constant 0 : i32
    %c0_i32_0 = arith.constant 0 : i32
    %c0_i32_1 = arith.constant 0 : i32
    return %arg0, %c0_i32, %arg1, %c0_i32_0 : i32, i32, i32, i32
  }
  func.func @transform_1(%arg0: i32, %arg1: i32) -> (i32, i32, i32) {
    %c0_i32 = arith.constant 0 : i32
    %c0_i32_0 = arith.constant 0 : i32
    return %arg0, %arg1, %c0_i32 : i32, i32, i32
  }
  func.func @transform_2(%arg0: i32, %arg1: i32) -> (i32, i32, i32) {
    %c0_i32 = arith.constant 0 : i32
    %c0_i32_0 = arith.constant 0 : i32
    %c0_i32_1 = arith.constant 0 : i32
    return %arg0, %c0_i32, %c0_i32_0 : i32, i32, i32
  }
  func.func @transform_3(%arg0: i32, %arg1: i32) -> (i32, i32, i32) {
    %c0_i32 = arith.constant 0 : i32
    %c0_i32_0 = arith.constant 0 : i32
    %c0_i32_1 = arith.constant 0 : i32
    return %arg0, %c0_i32, %c0_i32_0 : i32, i32, i32
  }
}

</mosaic_0001>

<bundles_post_ra>
// kernel: tpu_custom_call.1
= control target key start
LH: loop header
LB: loop body
LE: loop exit
PB: predicated region body
PF: predicated region fallthrough
CT: control target
= control target key end

     0   :  { %9 = vsyncpa [#allocation7], 0  ;;  %s1055_s0 = inlined_call_operand.hbm [shape: f32[2,4,2,128], index: 0, kind: input, shape index: {}]   ;;  %s1056_s1 = inlined_call_operand.hbm [shape: s32[2,2,128], index: 1, kind: input, shape index: {}]   ;;  %s1057_s2 = inlined_call_operand.vmem [shape: f32[2,4,1], index: 2, kind: output, shape index: {0}]   ;;  %s1058_s3 = inlined_call_operand.vmem [shape: f32[2,1,1], index: 3, kind: output, shape index: {1}]  }
   0x1   :  { %11 = vsyncpa [#allocation7 + $0x1], 0 }
   0x2   :  { %12 = vsyncpa [#allocation9], 0 }
   0x3   :  { %14 = vsyncpa [#allocation9 + $0x1], 0  ;;  %s833_s12 = smov 0   ;;  %s835_s13 = smov 0  }
   0x4   :  { %s837_s14 = smov 0   ;;  %s839_s15 = smov 0  }
   0x5   :  { %s841_s16 = smov 0   ;;  %s843_s17 = smov 0  }
   0x6 LB: > { %s601_s18 = sadd.s32 4294967295, %s806_s17   ;;  %s32_s19 = sadd.s32 1, %s802_s16  ;;  %s806_s17 = sphi %s843_s17, %s20_s17   ;;  %s802_s16 = sphi %s841_s16, %s1067_s16   ;;  %s798_s15 = sphi %s839_s15, %s1066_s15   ;;  %s794_s14 = sphi %s837_s14, %s1065_s14   ;;  %s790_s13 = sphi %s835_s13, %s1064_s13   ;;  %s786_s12 = sphi %s833_s12, %s1063_s12  }
   0x7   : > { %p34_p0 = scmp.ge.s32.totalorder %s32_s19, 2  ;;  %s41_s20 = sadd.s32 1, %s794_s14 }
   0x8   : > { %p48_p1 = scmp.ne.s32.totalorder %s794_s14, %s790_s13  ;;  %p49_p2 = scmp.eq.s32.totalorder %s806_s17, 0 }
   0x9   : > { %s1069_s19 = smov (%p34_p0, %s32_s19), 0  ;;  %p54_p4 = scmp.ne.s32.totalorder %s790_s13, %s786_s12 }
   0xa   : > { %p869_p3 = por %p49_p2, %p48_p1  ;;  %s36_s22 = ssub.s32 %s802_s16, %s1069_s19 }
   0xb   : > { %p55_p5 = scmp.eq.s32.totalorder %s601_s18, 0  ;;  %p39_p6 = scmp.eq.s32.totalorder %s36_s22, 0 }
   0xc   : > { %p632_p8 = scmp.lt.s32.totalorder %s806_s17, 2  ;;  %s885_s25 = sand.u32 1, %s794_s14  }
   0xd   : > { %p876_p7 = por %p55_p5, %p54_p4  ;;  %s620_s26 = sshll.u32 %s802_s16, 7 }
   0xe   : > { %s882_s24 = scalar_select %p39_p6, %s794_s14, %s41_s20  }
   0xf   : > { %s605_s27 = sshll.u32 %s885_s25, 3  ;;  %s169_s30 = scalar_lea.hbm %s1055_s0, %s620_s26 }
  0x10   : > { %s162_s4 = scalar_lea.vmem [#allocation6], %s605_s27  ;;  %p894_p9 = pnand %p632_p8, %p869_p3 }
  0x11   : > { %s170_s5 = sshll.u32 %s162_s4, 4  ;;  %s159_s7 = scalar_lea.sflag [#allocation7], %s885_s25  ;;  %s171_s5 = int_to_ptr.vmem [resolvable:$true] %s170_s5 }
  0x12   : > { %p698_p10 = pneg %p894_p9  ;;  %s709_s8 = scalar_lea.vmem %s171_s5, 128 }
  0x13   : > { %p710_p11 = scmp.ne.s32.totalorder %s171_s5, %s709_s8  ;;  %s808_s9 = smov [#allocation6]  }
  0x14   : > { %s714_s10 = sshll.u32 %s808_s9, 4  ;;  %s715_s10 = int_to_ptr.vmem [resolvable:$false] %s714_s10 }
  0x15   : > { %p712_p12 = pnand %p710_p11, %p698_p10  ;;  %s716_s11 = scalar_lea.vmem %s715_s10, 256 }
  0x16   : > { %p717_p0 = scmp.lt.s32.totalorder %s171_s5, %s715_s10  ;;  %p718_p1 = scmp.lt.s32.totalorder %s716_s11, %s709_s8 }
  0x17   : > { %p713_p13 = pneg %p712_p12 }
  0x18   : > { %p719_p2 = por %p718_p1, %p717_p0 }
  0x1a   : > { %p720_p3 = pnand %p719_p2, %p713_p13 }
  0x1c   : > { %723 = shalt.err (!%p720_p3)
}
  0x1d   : > { %s809_s12 = smov 32   ;;  %s810_s18 = smov 2  }
  0x1e   : > { %628 = dma.hbm_to_vmem [thread:$0]  (!%p894_p9), %s169_s30, 128, %s171_s5, %s159_s7, %s809_s12, %s809_s12, %s810_s18  }
  0x1f   : > { %p610_p4 = scmp.ge.s32.totalorder %s806_s17, 1  ;;  %p197_p5 = scmp.lt.s32.totalorder %s806_s17, 3 }
  0x20   : > { %s608_s20 = sshll.u32 %s885_s25, 1  ;;  %s609_s22 = sshll.u32 %s802_s16, 5 }
  0x21   : > { %p909_p6 = pnand %p610_p4, %p197_p5  ;;  %s184_s26 = scalar_lea.vmem [#allocation8], %s608_s20 }
  0x22   : > { %s192_s27 = sshll.u32 %s184_s26, 4  ;;  %s190_s4 = scalar_lea.hbm %s1056_s1, %s609_s22  ;;  %s193_s27 = int_to_ptr.vmem [resolvable:$true] %s192_s27 }
  0x23   : > { %s181_s8 = scalar_lea.sflag [#allocation9], %s885_s25  ;;  %s737_s9 = scalar_lea.vmem %s193_s27, 32 }
  0x24   : > { %p738_p8 = scmp.ne.s32.totalorder %s193_s27, %s737_s9  ;;  %s811_s30 = smov [#allocation8]  }
  0x25   : > { %s742_s5 = sshll.u32 %s811_s30, 4  ;;  %s743_s5 = int_to_ptr.vmem [resolvable:$false] %s742_s5 }
  0x26   : > { %p740_p11 = pnand %p738_p8, %p698_p10  ;;  %s744_s7 = scalar_lea.vmem %s743_s5, 64 }
  0x27   : > { %p745_p13 = scmp.lt.s32.totalorder %s193_s27, %s743_s5  ;;  %p746_p0 = scmp.lt.s32.totalorder %s744_s7, %s737_s9 }
  0x28   : > { %p741_p12 = pneg %p740_p11 }
  0x29   : > { %p747_p1 = por %p746_p0, %p745_p13 }
  0x2b   : > { %p748_p2 = pnand %p747_p1, %p741_p12 }
  0x2d   : > { %751 = shalt.err (!%p748_p2)
}
  0x2e   : > { %631 = dma.hbm_to_vmem [thread:$0]  (!%p894_p9), %s190_s4, 32, %s193_s27, %s181_s8  }
  0x2f   : > { %201 = sbr.rel (%p909_p6) target bundleno = 279 (0x117), region = 28  ;;  %s203_s25 = sand.u32 (!%p909_p6), 1, %s790_s13  }
  0x30   : > { %s611_s10 = sshll.u32 (!%p909_p6), %s203_s25, 3  ;;  %s204_s11 = scalar_lea.sflag (!%p909_p6), [#allocation7], %s203_s25 }
  0x31   : > { %s207_s12 = scalar_lea.vmem (!%p909_p6), [#allocation6], %s611_s10 }
  0x34   : > { %777 = dma.done.wait (%p876_p7), %s204_s11, 128  }
  0x35   : > { %779 = vsyncadd (%p876_p7), %s204_s11, 4294967168  ;;  %s612_s18 = sshll.u32 %s203_s25, 1  ;;  %s213_s20 = scalar_lea.sflag [#allocation9], %s203_s25 }
  0x36   : > { %s216_s22 = scalar_lea.vmem [#allocation8], %s612_s18 }
  0x37   : > { %781 = dma.done.wait (%p876_p7), %s213_s20, 32  }
  0x38   : > { %783 = vsyncadd (%p876_p7), %s213_s20, 4294967264  ;;  %v812_v0 = vmov 0.0   ;;  %v938_v1 = vld [vmem:[%s207_s12] sm:$0x3]  ;;  %v940_v2 = vld [vmem:[%s207_s12 + $0x2] sm:$0x3] }
  0x39   : > { %258 = vst [vmem:[#allocation3] sm:$0xf] %v812_v0  ;;  %257 = vst [vmem:[#allocation2] sm:$0xf] %v812_v0  ;;  %vm283_vm0 = vcmask 1041408   ;;  %vm316_vm1 = vcmask 1041409  }
  0x3a   : > { %259 = vst [vmem:[#allocation4] sm:$0xf] %v812_v0  ;;  %260 = vst [vmem:[#allocation5] sm:$0x1] %v812_v0  ;;  %v942_v3 = vld [vmem:[%s207_s12 + $0x4] sm:$0x3] }
  0x3b   : > { %v944_v4 = vld [vmem:[%s207_s12 + $0x6] sm:$0x3]  ;;  %v326_v5 = vsel %vm283_vm0, %v938_v1, 0.0  ;;  %v333_v6 = vsel %vm283_vm0, %v940_v2, 0.0  ;;  %v340_v9 = vsel %vm283_vm0, %v942_v3, 0.0  ;;  %v403_v13 = vsel %vm283_vm0, %v938_v1, -inf }
  0x3c   : > { %v327_v7 = vrot.slane %v326_v5, 4  ;;  %v334_v8 = vrot.slane %v333_v6, 4  ;;  %v347_v10 = vsel %vm283_vm0, %v944_v4, 0.0  ;;  %v341_v11 = vrot.slane %v340_v9, 4  ;;  %v265_v15 = vld [vmem:[%s216_s22] sm:$0x3] }
  0x3d   : > { %v348_v12 = vrot.slane %v347_v10, 4  ;;  %v404_v14 = vsel %vm283_vm0, %v940_v2, -inf  ;;  %vm318_vm2 = vcmask 1042434   ;;  %v405_v18 = vsel %vm283_vm0, %v942_v3, -inf  ;;  %p246_p7 = scmp.lt.s32.totalorder %s798_s15, 1 }
  0x3e   : > { %v328_v16 = vadd.f32 %v327_v7, %v326_v5  ;;  %v335_v17 = vadd.f32 %v334_v8, %v333_v6  ;;  %v406_v19 = vsel %vm283_vm0, %v944_v4, -inf  ;;  %vm320_vm3 = vcmask 1043459  }
  0x3f   : > { %v342_v20 = vadd.f32 %v341_v11, %v340_v9  ;;  %v349_v21 = vadd.f32 %v348_v12, %v347_v10  ;;  %v407_v22 = vmax.f32 %v403_v13, %v404_v14  ;;  %v408_v23 = vmax.f32 %v405_v18, %v406_v19  ;;  %s1071_s15 = smov (!%p246_p7, %s798_s15), 1 }
  0x40   : > { %v329_v24 = vrot.slane %v328_v16, 2  ;;  %v336_v25 = vrot.slane %v335_v17, 2  ;;  %vm266_vm4 = vcmp.eq.s32.totalorder %v265_v15, 0  ;;  %vm267_vm5 = vcmp.eq.s32.totalorder %v265_v15, 1  ;;  %v325_v51 = vld [vmem:[#allocation3] sm:$0xf]  ;;  %s252_s29 = scalar_lea.vmem %s1058_s3, %s1071_s15 }
  0x41   : > { %v343_v26 = vrot.slane %v342_v20, 2  ;;  %v350_v27 = vrot.slane %v349_v21, 2  ;;  %v962_v28 = vmax.f32 %v407_v22, %v408_v23  ;;  %vm268_vm6 = vcmp.eq.s32.totalorder %v265_v15, 2  ;;  %s613_s23 = sshll.u32 %s1071_s15, 2 }
  0x42   : > { %v330_v29 = vadd.f32 %v329_v24, %v328_v16  ;;  %v337_v30 = vadd.f32 %v336_v25, %v335_v17  ;;  %vm269_vm7 = vcmp.eq.s32.totalorder %v265_v15, 3  ;;  %v614_v31 = vsel %vm266_vm4, 1.0, %v812_v0  ;;  %s249_s26 = scalar_lea.vmem %s1057_s2, %s613_s23 }
  0x43   : > { %v344_v32 = vadd.f32 %v343_v26, %v342_v20  ;;  %v351_v33 = vadd.f32 %v350_v27, %v349_v21  ;;  %v410_v34 = vsub.f32 %v938_v1, %v962_v28  ;;  %v411_v35 = vsub.f32 %v940_v2, %v962_v28 }
  0x44   : > { %v331_v36 = vrot.slane %v330_v29, 1  ;;  %v338_v37 = vrot.slane %v337_v30, 1  ;;  %v412_v38 = vsub.f32 %v942_v3, %v962_v28  ;;  %v413_v39 = vsub.f32 %v944_v4, %v962_v28 }
  0x45   : > { %v345_v40 = vrot.slane %v344_v32, 1  ;;  %v352_v41 = vrot.slane %v351_v33, 1  ;;  %v414_v42 = vmul.f32 1.442695, %v410_v34  ;;  %v416_v43 = vmul.f32 1.442695, %v411_v35 }
  0x46   : > { %v332_v44 = vadd.f32 %v331_v36, %v330_v29  ;;  %v339_v45 = vadd.f32 %v338_v37, %v337_v30  ;;  %v418_v46 = vmul.f32 1.442695, %v412_v38  ;;  %v420_v47 = vmul.f32 1.442695, %v413_v39 }
  0x47   : > { %v346_v48 = vadd.f32 %v345_v40, %v344_v32  ;;  %v353_v49 = vadd.f32 %v352_v41, %v351_v33  ;;  %684 = vpow2.f32 %v414_v42  ;;  %v615_v50 = vsel %vm267_vm5, 1.0, %v812_v0 }
  0x48   : > { %v358_v52 = vsel %vm316_vm1, %v339_v45, %v332_v44  ;;  %686 = vpow2.f32 %v416_v43  ;;  %v616_v53 = vsel %vm268_vm6, 1.0, %v812_v0  ;;  %v617_v54 = vsel %vm269_vm7, 1.0, %v812_v0 }
  0x49   : > { %v359_v55 = vsel %vm318_vm2, %v346_v48, %v358_v52  ;;  %688 = vpow2.f32 %v418_v46  ;;  %v278_v56 = vmul.f32 %v614_v31, %v938_v1  ;;  %v279_v57 = vmul.f32 %v615_v50, %v940_v2 }
  0x4a   : > { %v360_v58 = vsel %vm320_vm3, %v353_v49, %v359_v55  ;;  %690 = vpow2.f32 %v420_v47  ;;  %vm450_vm8 = vcmask 1043456   ;;  %v280_v59 = vmul.f32 %v616_v53, %v942_v3  ;;  %v364_v55 = vld [vmem:[#allocation4] sm:$0xf] }
  0x4b   : > { %v281_v60 = vmul.f32 %v617_v54, %v944_v4  ;;  %v362_v61 = vadd.f32 %v360_v58, %v325_v51  ;;  %v365_v62 = vsel %vm283_vm0, %v614_v31, 0.0  ;;  %v372_v63 = vsel %vm283_vm0, %v615_v50, 0.0 }
  0x4c   : > { %v379_v0 = vsel %vm283_vm0, %v616_v53, 0.0  ;;  %v366_v5 = vrot.slane %v365_v62, 4  ;;  %v373_v6 = vrot.slane %v372_v63, 4  ;;  %v386_v2 = vsel %vm283_vm0, %v617_v54, 0.0 }
  0x4d   : > { %v380_v1 = vrot.slane %v379_v0, 4  ;;  %363 = vst [vmem:[#allocation3] sm:$0xf] %v362_v61  ;;  %v387_v7 = vrot.slane %v386_v2, 4  ;;  %v991_v8 = vsel %vm283_vm0, %v278_v56, 0.0  ;;  %v994_v3 = vsel %vm283_vm0, %v279_v57, 0.0 }
  0x4e   : > { %v997_v4 = vsel %vm283_vm0, %v280_v59, 0.0  ;;  %v367_v9 = vadd.f32 %v366_v5, %v365_v62  ;;  %v374_v10 = vadd.f32 %v373_v6, %v372_v63  ;;  %v285_v12 = vrot.slane %v991_v8, 4 }
  0x4f   : > { %v381_v11 = vadd.f32 %v380_v1, %v379_v0  ;;  %v388_v13 = vadd.f32 %v387_v7, %v386_v2  ;;  %v292_v14 = vrot.slane %v994_v3, 4  ;;  %v299_v15 = vrot.slane %v997_v4, 4 }
  0x50   : > { %v1003_v16 = vsel %vm283_vm0, %v281_v60, 0.0  ;;  %v368_v17 = vrot.slane %v367_v9, 2  ;;  %v375_v18 = vrot.slane %v374_v10, 2  ;;  %v286_v20 = vadd.f32 %v285_v12, %v991_v8  ;;  %v282_v12 = vld [vmem:[#allocation2] sm:$0xf] }
  0x51   : > { %v382_v19 = vrot.slane %v381_v11, 2  ;;  %v389_v21 = vrot.slane %v388_v13, 2  ;;  %v293_v22 = vadd.f32 %v292_v14, %v994_v3  ;;  %v300_v23 = vadd.f32 %v299_v15, %v997_v4 }
  0x52   : > { %v306_v24 = vrot.slane %v1003_v16, 4  ;;  %v369_v25 = vadd.f32 %v368_v17, %v367_v9  ;;  %v376_v26 = vadd.f32 %v375_v18, %v374_v10  ;;  %v287_v29 = vrot.slane %v286_v20, 2 }
  0x53   : > { %v383_v27 = vadd.f32 %v382_v19, %v381_v11  ;;  %v390_v30 = vadd.f32 %v389_v21, %v388_v13  ;;  %v294_v31 = vrot.slane %v293_v22, 2  ;;  %v301_v32 = vrot.slane %v300_v23, 2 }
  0x54   : > { %v307_v33 = vadd.f32 %v306_v24, %v1003_v16  ;;  %v685_v34 = vpop.eup %684  ;;  %v454_v35 = vld [vmem:[#allocation3] sm:$0xf]  ;;  %v370_v36 = vrot.slane %v369_v25, 1  ;;  %v377_v37 = vrot.slane %v376_v26, 1  ;;  %v288_v39 = vadd.f32 %v287_v29, %v286_v20 }
  0x55   : > { %v384_v38 = vrot.slane %v383_v27, 1  ;;  %v687_v40 = vpop.eup %686  ;;  %v455_v41 = vsel %vm450_vm8, %v454_v35, 0.0  ;;  %v391_v42 = vrot.slane %v390_v30, 1  ;;  %v295_v43 = vadd.f32 %v294_v31, %v293_v22 }
  0x56   : > { %v302_v44 = vadd.f32 %v301_v32, %v300_v23  ;;  %v689_v45 = vpop.eup %688  ;;  %456 = vadd.xlane.f32.xlu0 %v455_v41  ;;  %v371_v46 = vadd.f32 %v370_v36, %v369_v25  ;;  %v378_v47 = vadd.f32 %v377_v37, %v376_v26  ;;  %v289_v49 = vrot.slane %v288_v39, 1 }
  0x57   : > { %v385_v48 = vadd.f32 %v384_v38, %v383_v27  ;;  %v691_v50 = vpop.eup %690  ;;  %v392_v51 = vadd.f32 %v391_v42, %v390_v30  ;;  %v296_v52 = vrot.slane %v295_v43, 1  ;;  %v308_v54 = vrot.slane %v307_v33, 2 }
  0x58   : > { %v303_v53 = vrot.slane %v302_v44, 1  ;;  %v397_v56 = vsel %vm316_vm1, %v378_v47, %v371_v46  ;;  %v290_v57 = vadd.f32 %v289_v49, %v288_v39  ;;  %v422_v58 = vsel %vm283_vm0, %v685_v34, 0.0  ;;  %v436_v34 = vld [vmem:[#allocation5] sm:$0x1] }
  0x59   : > { %v423_v59 = vsel %vm283_vm0, %v687_v40, 0.0  ;;  %v398_v60 = vsel %vm318_vm2, %v385_v48, %v397_v56  ;;  %v297_v61 = vadd.f32 %v296_v52, %v295_v43  ;;  %v309_v63 = vadd.f32 %v308_v54, %v307_v33 }
  0x5a   : > { %v304_v62 = vadd.f32 %v303_v53, %v302_v44  ;;  %v399_v0 = vsel %vm320_vm3, %v392_v51, %v398_v60  ;;  %v424_v5 = vadd.f32 %v423_v59, %v422_v58  ;;  %v425_v6 = vsel %vm283_vm0, %v689_v45, 0.0 }
  0x5b   : > { %v401_v1 = vadd.f32 %v399_v0, %v364_v55  ;;  %v310_v2 = vrot.slane %v309_v63, 1  ;;  %v317_v7 = vsel %vm316_vm1, %v297_v61, %v290_v57  ;;  %v427_v9 = vsel %vm283_vm0, %v691_v50, 0.0 }
  0x5c   : > { %v319_v10 = vsel %vm318_vm2, %v304_v62, %v317_v7  ;;  %v426_v11 = vadd.f32 %v425_v6, %v424_v5  ;;  %v432_v20 = vadd.f32 %v994_v3, %v991_v8  ;;  %vm471_vm9 = vcmask 1040384  }
  0x5d   : > { %402 = vst [vmem:[#allocation4] sm:$0xf] %v401_v1  ;;  %v311_v13 = vadd.f32 %v310_v2, %v309_v63  ;;  %vm468_vm10 = vcmask 3072   ;;  %vm475_vm11 = vcmask 0  }
  0x5e   : > { %v428_v14 = vadd.f32 %v427_v9, %v426_v11  ;;  %v433_v23 = vadd.f32 %v432_v20, %v997_v4 }
  0x5f   : > { %v321_v15 = vsel %vm320_vm3, %v311_v13, %v319_v10 }
  0x60   : > { %v323_v17 = vadd.f32 %v321_v15, %v282_v12  ;;  %692 = vlog2.f32 %v428_v14  ;;  %v434_v26 = vadd.f32 %v433_v23, %v1003_v16 }
  0x62   : > { %324 = vst [vmem:[#allocation2] sm:$0xf] %v323_v17 }
  0x64   : > { %v458_v18 = vld [vmem:[#allocation4] sm:$0xf] }
  0x65   : > { %v459_v19 = vsel %vm450_vm8, %v458_v18, 0.0 }
  0x66   : > { %460 = vadd.xlane.f32.xlu0 %v459_v19 }
  0x69   : > { %v449_v21 = vld [vmem:[#allocation2] sm:$0xf] }
  0x6a   : > { %v451_v22 = vsel %vm450_vm8, %v449_v21, 0.0 }
  0x6b   : > { %452 = vadd.xlane.f32.xlu1 %v451_v22 }
  0x6d   : > { %v693_v24 = vpop.eup %692 }
  0x6e   : > { %v430_v25 = vmul.f32 0.6931472, %v693_v24 }
  0x70   : > { %v431_v27 = vadd.f32 %v430_v25, %v962_v28 }
  0x72   : > { %v435_v29 = vsub.f32 %v431_v27, %v434_v26 }
  0x74   : > { %v437_v30 = vsel %vm283_vm0, %v435_v29, 0.0 }
  0x75   : > { %v438_v31 = vrot.slane %v437_v30, 4 }
  0x77   : > { %v439_v32 = vadd.f32 %v438_v31, %v437_v30 }
  0x79   : > { %v440_v33 = vrot.slane %v439_v32, 2 }
  0x7b   : > { %v441_v8 = vadd.f32 %v440_v33, %v439_v32 }
  0x7d   : > { %v442_v3 = vrot.slane %v441_v8, 1 }
  0x7f   : > { %v443_v35 = vadd.f32 %v442_v3, %v441_v8 }
  0x81   : > { %v444_v4 = vadd.f32 %v443_v35, %v436_v34 }
  0x83   : > { %445 = vst [vmem:[#allocation5] sm:$0x1] %v444_v4 }
  0x8a   : > { %v470_v36 = vld [vmem:[#allocation5] sm:$0x1] }
  0x8b   : > { %v472_v37 = vsel %vm471_vm9, %v470_v36, 0.0 }
  0x8c   : > { %473 = vadd.xlane.f32.xlu1 %v472_v37 }
  0xdf   : > { %v457_v16 = vpop.xlane.xlu0 %456 }
  0xef   : > { %v461_v28 = vpop.xlane.xlu0 %460 }
  0xf0   : > { %v464_v38 = vadd.f32 %v461_v28, %v457_v16 }
  0xf2   : > { %v465_v39 = vadd.f32 1.0, %v464_v38 }
  0xf4   : > { %694 = vrcp.f32 %v465_v39  ;;  %v453_v40 = vpop.xlane.xlu1 %452 }
  0xf5   : > { %v462_v41 = vmul.f32 2.0, %v453_v40 }
  0xf7   : > { %v463_v42 = vadd.f32 1.0, %v462_v41 }
 0x101   : > { %v695_v43 = vpop.eup %694 }
 0x102   : > { %v467_v44 = vmul.f32 %v695_v43, %v463_v42 }
 0x104   : > { %469 = vst.msk [vmem:[%s249_s26] sm:$0xf] %vm468_vm10, %v467_v44 }
 0x115   : > { %v474_v45 = vpop.xlane.xlu1 %473 }
 0x116   : > { %476 = vst.msk [vmem:[%s252_s29] sm:$0x1] %vm475_vm11, %v474_v45 }
 0x117 PF: > { %s20_s17 = sadd.s32 1, %s806_s17   ;;  %s1063_s12 = smov %s790_s13 }
 0x118   : > { %p17_p9 = scmp.ge.s32.totalorder %s20_s17, 4   ;;  %s1064_s13 = smov %s794_s14 }
 0x119   : > { %s1065_s14 = smov %s882_s24  ;;  %s1066_s15 = smov %s802_s16 }
 0x11a   : > { %s1067_s16 = smov %s1069_s19  ;;  %19 = sbr.rel (!%p17_p9) target bundleno = 6 (0x6), region = 101 }
 0x11f   :  { %508 = vsyncpa [#allocation7], 1 }
 0x120   :  { %510 = vsyncpa [#allocation7 + $0x1], 1 }
 0x121   :  { %511 = vsyncpa [#allocation9], 1 }
 0x122   :  { %513 = vsyncpa [#allocation9 + $0x1], 1 }

</bundles_post_ra>
